<compile_context>
chip_gen: v7x
topology: tpu7x:2x2x1
jax: 0.10.0
libtpu: 0.0.40
codegen_flags: <defaults>
</compile_context>

<pallas_src>
import numpy as np
import jax
import jax.numpy as jnp
from jax.experimental import pallas as pl
from jax.experimental.pallas import tpu as pltpu

DATA_DIM = 16
HIDDEN_DIM = 32
NUM_RES_BLOCKS = 2
BATCH = 8

LANE = 128
H_PAD = ((HIDDEN_DIM + LANE - 1) // LANE) * LANE    # 128
N_LAYERS = NUM_RES_BLOCKS * 3

_INV_SQRT2 = np.float32(1.0 / np.sqrt(2.0))


def _silu(x):
    # sigmoid lowers to EUP exp + reciprocal (free VLIW slot vs. VALU).
    return x * jax.nn.sigmoid(x)


def resnet_fc_kernel(x_ref, map_w_ref, map_b_ref, blk_w_ref, blk_b_ref, o_ref):
    # x_ref:     (TB, DATA_DIM)            -- unpadded input features
    # map_w_ref: (DATA_DIM, H_PAD)         map_b_ref: (1, H_PAD)
    # blk_w_ref: (N_LAYERS, H_PAD, H_PAD)  blk_b_ref: (N_LAYERS, 1, H_PAD)
    # o_ref:     (TB, HIDDEN_DIM)          -- unpadded output features
    h = (jnp.dot(x_ref[...], map_w_ref[...],
                 preferred_element_type=jnp.float32) + map_b_ref[...])
    for blk in range(NUM_RES_BLOCKS):            # static unroll: NB is small
        r = h
        for layer in range(3):
            li = blk * 3 + layer                 # flattened static index
            r = (jnp.dot(r, blk_w_ref[li],
                         preferred_element_type=jnp.float32) + blk_b_ref[li])
            r = _silu(r)
        h = (h + r) * _INV_SQRT2
    # Padded columns of h are exactly 0; only the real 32 are written back.
    o_ref[...] = h[:, :HIDDEN_DIM].astype(o_ref.dtype)


def prepare_params(map_w, map_b, blk_w, blk_b):
    """Pad hidden (output) dims to 128 lanes and flatten block weights.

    Called ONCE at init (not per forward).  Zero padding is exact: padded
    weight cols/rows and biases are 0, so the padded hidden columns stay 0
    through bias, SiLU and the residual, and the real columns are bit-exact.
    """
    map_w_p = jnp.zeros((DATA_DIM, H_PAD), jnp.float32)
    map_w_p = map_w_p.at[:, :HIDDEN_DIM].set(map_w)
    map_b_p = jnp.zeros((1, H_PAD), jnp.float32).at[:, :HIDDEN_DIM].set(map_b)

    blk_w_f = blk_w.reshape(N_LAYERS, HIDDEN_DIM, HIDDEN_DIM)
    blk_b_f = blk_b.reshape(N_LAYERS, 1, HIDDEN_DIM)
    blk_w_p = jnp.zeros((N_LAYERS, H_PAD, H_PAD), jnp.float32)
    blk_w_p = blk_w_p.at[:, :HIDDEN_DIM, :HIDDEN_DIM].set(blk_w_f)
    blk_b_p = jnp.zeros((N_LAYERS, 1, H_PAD), jnp.float32)
    blk_b_p = blk_b_p.at[:, :, :HIDDEN_DIM].set(blk_b_f)
    return map_w_p, map_b_p, blk_w_p, blk_b_p


def _round_up(v, m):
    return ((v + m - 1) // m) * m


def resnet_fc_forward(x, map_w_p, map_b_p, blk_w_p, blk_b_p, *,
                      block_batch=2048):
    """Forward pass. Expects params already prepared by prepare_params()."""
    B = x.shape[0]
    if B <= 8:
        # Single full-array block (block dim == array dim is legal).
        TB = B
    else:
        # >=2 grid steps when possible (both v7x TCs), tile a multiple of 8,
        # capped at block_batch to amortize ~0.35us/step grid overhead while
        # keeping intermediates (~1 MiB per (TB,128) f32 slab) well in VMEM.
        TB = min(block_batch, _round_up(pl.cdiv(B, 2), 8))
    grid = (pl.cdiv(B, TB),)

    return pl.pallas_call(
        resnet_fc_kernel,
        out_shape=jax.ShapeDtypeStruct((B, HIDDEN_DIM), jnp.float32),
        grid_spec=pltpu.PrefetchScalarGridSpec(
            num_scalar_prefetch=0,
            grid=grid,
            in_specs=[
                # batch-tiled activations, unpadded features (16 == full dim)
                pl.BlockSpec((TB, DATA_DIM), lambda i: (i, 0)),
                # weights/biases: constant index_map -> VMEM-resident
                pl.BlockSpec((DATA_DIM, H_PAD), lambda i: (0, 0)),
                pl.BlockSpec((1, H_PAD), lambda i: (0, 0)),
                pl.BlockSpec((N_LAYERS, H_PAD, H_PAD), lambda i: (0, 0, 0)),
                pl.BlockSpec((N_LAYERS, 1, H_PAD), lambda i: (0, 0, 0)),
            ],
            # unpadded output (32 == full last dim) -> 4x less writeback bytes
            out_specs=pl.BlockSpec((TB, HIDDEN_DIM), lambda i: (i, 0)),
        ),
        compiler_params=pltpu.CompilerParams(
            dimension_semantics=("parallel",),   # shard batch tiles across TCs
        ),
    )(x, map_w_p, map_b_p, blk_w_p, blk_b_p)


def init_params(key):
    """Deterministic init mimicking nn.Linear's U(-1/sqrt(fan_in), 1/sqrt(fan_in))."""
    ks = jax.random.split(key, 4)
    bnd_map = 1.0 / np.sqrt(DATA_DIM)
    map_w = jax.random.uniform(ks[0], (DATA_DIM, HIDDEN_DIM), jnp.float32,
                               -bnd_map, bnd_map)
    map_b = jax.random.uniform(ks[1], (1, HIDDEN_DIM), jnp.float32,
                               -bnd_map, bnd_map)
    bnd_h = 1.0 / np.sqrt(HIDDEN_DIM)
    blk_w = jax.random.uniform(ks[2], (NUM_RES_BLOCKS, 3, HIDDEN_DIM, HIDDEN_DIM),
                               jnp.float32, -bnd_h, bnd_h)
    blk_b = jax.random.uniform(ks[3], (NUM_RES_BLOCKS, 3, 1, HIDDEN_DIM),
                               jnp.float32, -bnd_h, bnd_h)
    return map_w, map_b, blk_w, blk_b


def reference_forward(x, map_w, map_b, blk_w, blk_b):
    h = x @ map_w + map_b
    for blk in range(NUM_RES_BLOCKS):
        r = h
        for layer in range(3):
            r = r @ blk_w[blk, layer] + blk_b[blk, layer]
            r = r * jax.nn.sigmoid(r)
        h = (h + r) / np.sqrt(2.0)
    return h


if __name__ == "__main__":
    key = jax.random.PRNGKey(0)
    kx, kp = jax.random.split(key)
    x = jax.random.normal(kx, (BATCH, DATA_DIM), jnp.float32)
    raw_params = init_params(kp)

    # Pad / flatten weights ONCE (hoisted out of the forward hot path).
    padded_params = prepare_params(*raw_params)
    padded_params = jax.block_until_ready(padded_params)

    out = resnet_fc_forward(x, *padded_params)
    out = jax.block_until_ready(out)

    ref = reference_forward(x, *raw_params)
    np.testing.assert_allclose(np.asarray(out), np.asarray(ref),
                               rtol=1e-5, atol=1e-5)
    print("KERNEL_OK")
</pallas_src>

<mosaic_0001>
module attributes {stable_mosaic.version = 11 : i64} {
  func.func @resnet_fc_kernel(%arg0: i32, %arg1: memref<8x16xf32, #tpu.memory_space<vmem>>, %arg2: memref<16x128xf32, #tpu.memory_space<vmem>>, %arg3: memref<1x128xf32, #tpu.memory_space<vmem>>, %arg4: memref<6x128x128xf32, #tpu.memory_space<vmem>>, %arg5: memref<6x1x128xf32, #tpu.memory_space<vmem>>, %arg6: memref<8x32xf32, #tpu.memory_space<vmem>>) attributes {dimension_semantics = [#tpu.dimension_semantics<parallel>], iteration_bounds = array<i64: 1>, scalar_prefetch = 0 : i64, scratch_operands = 0 : i64, tpu.core_type = #tpu.core_type<tc>, window_params = [{transform_indices = @transform_0, window_bounds = array<i64: 8, 16>}, {pipeline_mode = #tpu.pipeline_mode<synchronous>, transform_indices = @transform_1, window_bounds = array<i64: 16, 128>}, {pipeline_mode = #tpu.pipeline_mode<synchronous>, transform_indices = @transform_2, window_bounds = array<i64: 1, 128>}, {pipeline_mode = #tpu.pipeline_mode<synchronous>, transform_indices = @transform_3, window_bounds = array<i64: 6, 128, 128>}, {pipeline_mode = #tpu.pipeline_mode<synchronous>, transform_indices = @transform_4, window_bounds = array<i64: 6, 1, 128>}, {transform_indices = @transform_5, window_bounds = array<i64: 8, 32>}]} {
    %c0 = arith.constant 0 : index
    %c0_0 = arith.constant 0 : index
    %0 = vector.load %arg1[%c0, %c0_0] : memref<8x16xf32, #tpu.memory_space<vmem>>, vector<8x16xf32>
    %c0_1 = arith.constant 0 : index
    %c0_2 = arith.constant 0 : index
    %1 = vector.load %arg2[%c0_1, %c0_2] : memref<16x128xf32, #tpu.memory_space<vmem>>, vector<16x128xf32>
    %cst = arith.constant dense<0.000000e+00> : vector<8x128xf32>
    %2 = tpu.matmul %0, %1, %cst {dimension_numbers = #tpu.dot_dimension_numbers<[1], [0], [0], [1], [0, 0, 1, 1], [], []>} : vector<8x16xf32>, vector<16x128xf32>, vector<8x128xf32> -> vector<8x128xf32>
    %c0_3 = arith.constant 0 : index
    %c0_4 = arith.constant 0 : index
    %3 = vector.load %arg3[%c0_3, %c0_4] : memref<1x128xf32, #tpu.memory_space<vmem>>, vector<1x128xf32>
    %4 = vector.broadcast %3 : vector<1x128xf32> to vector<8x128xf32>
    %5 = arith.addf %2, %4 : vector<8x128xf32>
    %c0_5 = arith.constant 0 : index
    %c0_6 = arith.constant 0 : index
    %c0_7 = arith.constant 0 : index
    %6 = vector.load %arg4[%c0_5, %c0_6, %c0_7] : memref<6x128x128xf32, #tpu.memory_space<vmem>>, vector<1x128x128xf32>
    %7 = vector.shape_cast %6 : vector<1x128x128xf32> to vector<128x128xf32>
    %cst_8 = arith.constant dense<0.000000e+00> : vector<8x128xf32>
    %8 = tpu.matmul %5, %7, %cst_8 {dimension_numbers = #tpu.dot_dimension_numbers<[1], [0], [0], [1], [0, 0, 1, 1], [], []>} : vector<8x128xf32>, vector<128x128xf32>, vector<8x128xf32> -> vector<8x128xf32>
    %c0_9 = arith.constant 0 : index
    %c0_10 = arith.constant 0 : index
    %c0_11 = arith.constant 0 : index
    %9 = vector.load %arg5[%c0_9, %c0_10, %c0_11] : memref<6x1x128xf32, #tpu.memory_space<vmem>>, vector<1x1x128xf32>
    %10 = vector.shape_cast %9 : vector<1x1x128xf32> to vector<1x128xf32>
    %11 = vector.broadcast %10 : vector<1x128xf32> to vector<8x128xf32>
    %12 = arith.addf %8, %11 : vector<8x128xf32>
    %13 = arith.negf %12 : vector<8x128xf32>
    %14 = math.exp %13 : vector<8x128xf32>
    %cst_12 = arith.constant 1.000000e+00 : f32
    %15 = vector.broadcast %cst_12 : f32 to vector<8x128xf32>
    %16 = arith.addf %15, %14 : vector<8x128xf32>
    %17 = arith.divf %15, %16 : vector<8x128xf32>
    %18 = arith.mulf %12, %17 : vector<8x128xf32>
    %c1 = arith.constant 1 : index
    %c0_13 = arith.constant 0 : index
    %c0_14 = arith.constant 0 : index
    %19 = vector.load %arg4[%c1, %c0_13, %c0_14] : memref<6x128x128xf32, #tpu.memory_space<vmem>>, vector<1x128x128xf32>
    %20 = vector.shape_cast %19 : vector<1x128x128xf32> to vector<128x128xf32>
    %cst_15 = arith.constant dense<0.000000e+00> : vector<8x128xf32>
    %21 = tpu.matmul %18, %20, %cst_15 {dimension_numbers = #tpu.dot_dimension_numbers<[1], [0], [0], [1], [0, 0, 1, 1], [], []>} : vector<8x128xf32>, vector<128x128xf32>, vector<8x128xf32> -> vector<8x128xf32>
    %c1_16 = arith.constant 1 : index
    %c0_17 = arith.constant 0 : index
    %c0_18 = arith.constant 0 : index
    %22 = vector.load %arg5[%c1_16, %c0_17, %c0_18] : memref<6x1x128xf32, #tpu.memory_space<vmem>>, vector<1x1x128xf32>
    %23 = vector.shape_cast %22 : vector<1x1x128xf32> to vector<1x128xf32>
    %24 = vector.broadcast %23 : vector<1x128xf32> to vector<8x128xf32>
    %25 = arith.addf %21, %24 : vector<8x128xf32>
    %26 = arith.negf %25 : vector<8x128xf32>
    %27 = math.exp %26 : vector<8x128xf32>
    %cst_19 = arith.constant 1.000000e+00 : f32
    %28 = vector.broadcast %cst_19 : f32 to vector<8x128xf32>
    %29 = arith.addf %28, %27 : vector<8x128xf32>
    %30 = arith.divf %28, %29 : vector<8x128xf32>
    %31 = arith.mulf %25, %30 : vector<8x128xf32>
    %c2 = arith.constant 2 : index
    %c0_20 = arith.constant 0 : index
    %c0_21 = arith.constant 0 : index
    %32 = vector.load %arg4[%c2, %c0_20, %c0_21] : memref<6x128x128xf32, #tpu.memory_space<vmem>>, vector<1x128x128xf32>
    %33 = vector.shape_cast %32 : vector<1x128x128xf32> to vector<128x128xf32>
    %cst_22 = arith.constant dense<0.000000e+00> : vector<8x128xf32>
    %34 = tpu.matmul %31, %33, %cst_22 {dimension_numbers = #tpu.dot_dimension_numbers<[1], [0], [0], [1], [0, 0, 1, 1], [], []>} : vector<8x128xf32>, vector<128x128xf32>, vector<8x128xf32> -> vector<8x128xf32>
    %c2_23 = arith.constant 2 : index
    %c0_24 = arith.constant 0 : index
    %c0_25 = arith.constant 0 : index
    %35 = vector.load %arg5[%c2_23, %c0_24, %c0_25] : memref<6x1x128xf32, #tpu.memory_space<vmem>>, vector<1x1x128xf32>
    %36 = vector.shape_cast %35 : vector<1x1x128xf32> to vector<1x128xf32>
    %37 = vector.broadcast %36 : vector<1x128xf32> to vector<8x128xf32>
    %38 = arith.addf %34, %37 : vector<8x128xf32>
    %39 = arith.negf %38 : vector<8x128xf32>
    %40 = math.exp %39 : vector<8x128xf32>
    %cst_26 = arith.constant 1.000000e+00 : f32
    %41 = vector.broadcast %cst_26 : f32 to vector<8x128xf32>
    %42 = arith.addf %41, %40 : vector<8x128xf32>
    %43 = arith.divf %41, %42 : vector<8x128xf32>
    %44 = arith.mulf %38, %43 : vector<8x128xf32>
    %45 = arith.addf %5, %44 : vector<8x128xf32>
    %cst_27 = arith.constant 0.707106769 : f32
    %46 = vector.broadcast %cst_27 : f32 to vector<8x128xf32>
    %47 = arith.mulf %45, %46 : vector<8x128xf32>
    %c3 = arith.constant 3 : index
    %c0_28 = arith.constant 0 : index
    %c0_29 = arith.constant 0 : index
    %48 = vector.load %arg4[%c3, %c0_28, %c0_29] : memref<6x128x128xf32, #tpu.memory_space<vmem>>, vector<1x128x128xf32>
    %49 = vector.shape_cast %48 : vector<1x128x128xf32> to vector<128x128xf32>
    %cst_30 = arith.constant dense<0.000000e+00> : vector<8x128xf32>
    %50 = tpu.matmul %47, %49, %cst_30 {dimension_numbers = #tpu.dot_dimension_numbers<[1], [0], [0], [1], [0, 0, 1, 1], [], []>} : vector<8x128xf32>, vector<128x128xf32>, vector<8x128xf32> -> vector<8x128xf32>
    %c3_31 = arith.constant 3 : index
    %c0_32 = arith.constant 0 : index
    %c0_33 = arith.constant 0 : index
    %51 = vector.load %arg5[%c3_31, %c0_32, %c0_33] : memref<6x1x128xf32, #tpu.memory_space<vmem>>, vector<1x1x128xf32>
    %52 = vector.shape_cast %51 : vector<1x1x128xf32> to vector<1x128xf32>
    %53 = vector.broadcast %52 : vector<1x128xf32> to vector<8x128xf32>
    %54 = arith.addf %50, %53 : vector<8x128xf32>
    %55 = arith.negf %54 : vector<8x128xf32>
    %56 = math.exp %55 : vector<8x128xf32>
    %cst_34 = arith.constant 1.000000e+00 : f32
    %57 = vector.broadcast %cst_34 : f32 to vector<8x128xf32>
    %58 = arith.addf %57, %56 : vector<8x128xf32>
    %59 = arith.divf %57, %58 : vector<8x128xf32>
    %60 = arith.mulf %54, %59 : vector<8x128xf32>
    %c4 = arith.constant 4 : index
    %c0_35 = arith.constant 0 : index
    %c0_36 = arith.constant 0 : index
    %61 = vector.load %arg4[%c4, %c0_35, %c0_36] : memref<6x128x128xf32, #tpu.memory_space<vmem>>, vector<1x128x128xf32>
    %62 = vector.shape_cast %61 : vector<1x128x128xf32> to vector<128x128xf32>
    %cst_37 = arith.constant dense<0.000000e+00> : vector<8x128xf32>
    %63 = tpu.matmul %60, %62, %cst_37 {dimension_numbers = #tpu.dot_dimension_numbers<[1], [0], [0], [1], [0, 0, 1, 1], [], []>} : vector<8x128xf32>, vector<128x128xf32>, vector<8x128xf32> -> vector<8x128xf32>
    %c4_38 = arith.constant 4 : index
    %c0_39 = arith.constant 0 : index
    %c0_40 = arith.constant 0 : index
    %64 = vector.load %arg5[%c4_38, %c0_39, %c0_40] : memref<6x1x128xf32, #tpu.memory_space<vmem>>, vector<1x1x128xf32>
    %65 = vector.shape_cast %64 : vector<1x1x128xf32> to vector<1x128xf32>
    %66 = vector.broadcast %65 : vector<1x128xf32> to vector<8x128xf32>
    %67 = arith.addf %63, %66 : vector<8x128xf32>
    %68 = arith.negf %67 : vector<8x128xf32>
    %69 = math.exp %68 : vector<8x128xf32>
    %cst_41 = arith.constant 1.000000e+00 : f32
    %70 = vector.broadcast %cst_41 : f32 to vector<8x128xf32>
    %71 = arith.addf %70, %69 : vector<8x128xf32>
    %72 = arith.divf %70, %71 : vector<8x128xf32>
    %73 = arith.mulf %67, %72 : vector<8x128xf32>
    %c5 = arith.constant 5 : index
    %c0_42 = arith.constant 0 : index
    %c0_43 = arith.constant 0 : index
    %74 = vector.load %arg4[%c5, %c0_42, %c0_43] : memref<6x128x128xf32, #tpu.memory_space<vmem>>, vector<1x128x128xf32>
    %75 = vector.shape_cast %74 : vector<1x128x128xf32> to vector<128x128xf32>
    %cst_44 = arith.constant dense<0.000000e+00> : vector<8x128xf32>
    %76 = tpu.matmul %73, %75, %cst_44 {dimension_numbers = #tpu.dot_dimension_numbers<[1], [0], [0], [1], [0, 0, 1, 1], [], []>} : vector<8x128xf32>, vector<128x128xf32>, vector<8x128xf32> -> vector<8x128xf32>
    %c5_45 = arith.constant 5 : index
    %c0_46 = arith.constant 0 : index
    %c0_47 = arith.constant 0 : index
    %77 = vector.load %arg5[%c5_45, %c0_46, %c0_47] : memref<6x1x128xf32, #tpu.memory_space<vmem>>, vector<1x1x128xf32>
    %78 = vector.shape_cast %77 : vector<1x1x128xf32> to vector<1x128xf32>
    %79 = vector.broadcast %78 : vector<1x128xf32> to vector<8x128xf32>
    %80 = arith.addf %76, %79 : vector<8x128xf32>
    %81 = arith.negf %80 : vector<8x128xf32>
    %82 = math.exp %81 : vector<8x128xf32>
    %cst_48 = arith.constant 1.000000e+00 : f32
    %83 = vector.broadcast %cst_48 : f32 to vector<8x128xf32>
    %84 = arith.addf %83, %82 : vector<8x128xf32>
    %85 = arith.divf %83, %84 : vector<8x128xf32>
    %86 = arith.mulf %80, %85 : vector<8x128xf32>
    %87 = arith.addf %47, %86 : vector<8x128xf32>
    %cst_49 = arith.constant 0.707106769 : f32
    %88 = vector.broadcast %cst_49 : f32 to vector<8x128xf32>
    %89 = arith.mulf %87, %88 : vector<8x128xf32>
    %90 = vector.extract_strided_slice %89 {offsets = [0, 0], sizes = [8, 32], strides = [1, 1]} : vector<8x128xf32> to vector<8x32xf32>
    %c0_50 = arith.constant 0 : index
    %c0_51 = arith.constant 0 : index
    %91 = vector.load %arg6[%c0_50, %c0_51] : memref<8x32xf32, #tpu.memory_space<vmem>>, vector<8x32xf32>
    tpu.vector_store %arg6[%c0_50, %c0_51], %90 {strides = array<i32>} : memref<8x32xf32, #tpu.memory_space<vmem>>, vector<8x32xf32>,
    return
  }
  func.func @transform_0(%arg0: i32) -> (i32, i32) {
    %c0_i32 = arith.constant 0 : i32
    %c0_i32_0 = arith.constant 0 : i32
    return %arg0, %c0_i32 : i32, i32
  }
  func.func @transform_1(%arg0: i32) -> (i32, i32) {
    %c0_i32 = arith.constant 0 : i32
    %c0_i32_0 = arith.constant 0 : i32
    %c0_i32_1 = arith.constant 0 : i32
    return %c0_i32, %c0_i32_0 : i32, i32
  }
  func.func @transform_2(%arg0: i32) -> (i32, i32) {
    %c0_i32 = arith.constant 0 : i32
    %c0_i32_0 = arith.constant 0 : i32
    %c0_i32_1 = arith.constant 0 : i32
    return %c0_i32, %c0_i32_0 : i32, i32
  }
  func.func @transform_3(%arg0: i32) -> (i32, i32, i32) {
    %c0_i32 = arith.constant 0 : i32
    %c0_i32_0 = arith.constant 0 : i32
    %c0_i32_1 = arith.constant 0 : i32
    %c0_i32_2 = arith.constant 0 : i32
    return %c0_i32, %c0_i32_0, %c0_i32_1 : i32, i32, i32
  }
  func.func @transform_4(%arg0: i32) -> (i32, i32, i32) {
    %c0_i32 = arith.constant 0 : i32
    %c0_i32_0 = arith.constant 0 : i32
    %c0_i32_1 = arith.constant 0 : i32
    %c0_i32_2 = arith.constant 0 : i32
    return %c0_i32, %c0_i32_0, %c0_i32_1 : i32, i32, i32
  }
  func.func @transform_5(%arg0: i32) -> (i32, i32) {
    %c0_i32 = arith.constant 0 : i32
    %c0_i32_0 = arith.constant 0 : i32
    return %arg0, %c0_i32 : i32, i32
  }
}

</mosaic_0001>

<bundles_post_ra>
// kernel: tpu_custom_call.1
= control target key start
LH: loop header
LB: loop body
LE: loop exit
PB: predicated region body
PF: predicated region fallthrough
CT: control target
= control target key end

     0   :  { %10 = vsyncpa [#allocation3], 0  ;;  %s1576_s0 = inlined_call_operand.hbm [shape: f32[8,16], index: 0, kind: input, shape index: {}]   ;;  %s1577_s1 = inlined_call_operand.hbm [shape: f32[16,128], index: 1, kind: input, shape index: {}]   ;;  %s1578_s2 = inlined_call_operand.vmem [shape: f32[1,128], index: 2, kind: input, shape index: {}]   ;;  %s1579_s3 = inlined_call_operand.hbm [shape: f32[6,128,128], index: 3, kind: input, shape index: {}]   ;;  %s1580_s4 = inlined_call_operand.vmem [shape: f32[6,1,128], index: 4, kind: input, shape index: {}]   ;;  %s1581_s5 = inlined_call_operand.hbm [shape: f32[8,32], index: 5, kind: output, shape index: {}]  }
   0x1   :  { %11 = vsyncpa [#allocation6], 0 }
   0x2   :  { %12 = vsyncpa [#allocation4], 0  ;;  %s1391_s18 = smov [#allocation5]   ;;  %s1297_s22 = scalar_lea.hbm %s1577_s1, 256 }
   0x3   :  { %s28_s19 = sshll.u32 %s1391_s18, 4  ;;  %p1298_p0 = scmp.ne.s32.totalorder %s1577_s1, %s1297_s22  ;;  %s29_s19 = int_to_ptr.vmem [resolvable:$true] %s28_s19 }
   0x4   :  { %p1301_p1 = scmp.lt.u32.totalorder %s1297_s22, %s1577_s1 }
   0x6   :  { %p1303_p2 = pnand %p1301_p1, %p1298_p0 }
   0x8   :  { %1306 = shalt.err (!%p1303_p2)
}
   0x9   :  { %s1307_s27 = scalar_lea.vmem %s29_s19, 256  ;;  %p1312_p4 = scmp.lt.s32.totalorder %s29_s19, %s29_s19 }
   0xa   :  { %p1308_p3 = scmp.ne.s32.totalorder %s29_s19, %s1307_s27  ;;  %p1313_p5 = scmp.lt.s32.totalorder %s1307_s27, %s1307_s27 }
   0xc   :  { %p1314_p6 = por %p1313_p5, %p1312_p4 }
   0xe   :  { %p1315_p7 = pnand %p1314_p6, %p1308_p3 }
  0x10   :  { %1318 = shalt.err (!%p1315_p7)
}
  0x11   :  { %s1392_s28 = smov 128   ;;  %s1393_s29 = smov 8  }
  0x12   :  { %34 = dma.hbm_to_vmem [thread:$0]  %s1577_s1, 256, %s29_s19, [#allocation6], %s1392_s28, %s1392_s28, %s1393_s29  }
  0x13   :  { %s1394_s7 = smov [#allocation2]   ;;  %s1395_s9 = smov [#allocation7]  }
  0x14   :  { %s19_s8 = sshll.u32 %s1394_s7, 4  ;;  %s42_s10 = sshll.u32 %s1395_s9, 4  ;;  %s20_s8 = int_to_ptr.vmem [resolvable:$true] %s19_s8  ;;  %s43_s10 = int_to_ptr.vmem [resolvable:$true] %s42_s10 }
  0x15   :  { %s1319_s13 = scalar_lea.hbm %s1576_s0, 128 }
  0x16   :  { %p1320_p8 = scmp.ne.s32.totalorder %s1576_s0, %s1319_s13  ;;  %p1323_p9 = scmp.lt.u32.totalorder %s1319_s13, %s1576_s0 }
  0x18   :  { %p1325_p10 = pnand %p1323_p9, %p1320_p8 }
  0x1a   :  { %1328 = shalt.err (!%p1325_p10)
}
  0x1b   :  { %s1329_s1 = scalar_lea.vmem %s20_s8, 128  ;;  %p1334_p12 = scmp.lt.s32.totalorder %s20_s8, %s20_s8 }
  0x1c   :  { %p1330_p11 = scmp.ne.s32.totalorder %s20_s8, %s1329_s1  ;;  %p1335_p13 = scmp.lt.s32.totalorder %s1329_s1, %s1329_s1 }
  0x1e   :  { %p1336_p0 = por %p1335_p13, %p1334_p12 }
  0x20   :  { %p1337_p1 = pnand %p1336_p0, %p1330_p11 }
  0x22   :  { %1340 = shalt.err (!%p1337_p1)
}
  0x23   :  { %22 = dma.hbm_to_vmem [thread:$0]  %s1576_s0, 128, %s20_s8, [#allocation3]  }
  0x24   :  { %s1341_s22 = scalar_lea.hbm %s1579_s3, 12288 }
  0x25   :  { %p1342_p2 = scmp.ne.s32.totalorder %s1579_s3, %s1341_s22  ;;  %p1345_p3 = scmp.lt.u32.totalorder %s1341_s22, %s1579_s3 }
  0x27   :  { %p1347_p4 = pnand %p1345_p3, %p1342_p2 }
  0x29   :  { %1350 = shalt.err (!%p1347_p4)
}
  0x2a   :  { %s1351_s27 = scalar_lea.vmem %s43_s10, 12288  ;;  %p1356_p6 = scmp.lt.s32.totalorder %s43_s10, %s43_s10 }
  0x2b   :  { %p1352_p5 = scmp.ne.s32.totalorder %s43_s10, %s1351_s27  ;;  %p1357_p7 = scmp.lt.s32.totalorder %s1351_s27, %s1351_s27 }
  0x2d   :  { %p1358_p8 = por %p1357_p7, %p1356_p6 }
  0x2f   :  { %p1359_p9 = pnand %p1358_p8, %p1352_p5 }
  0x31   :  { %1362 = shalt.err (!%p1359_p9)
}
  0x32   :  { %48 = dma.hbm_to_vmem [thread:$0]  %s1579_s3, 12288, %s43_s10, [#allocation6], %s1392_s28, %s1392_s28, %s1393_s29  }
  0x33   :  { %1385 = dma.done.wait [#allocation3], 128  }
  0x34   :  { %1386 = vsyncadd [#allocation3], 4294967168 }
  0x35   :  { %1387 = dma.done.wait [#allocation6], 12544  }
  0x36   :  { %1388 = vsyncadd [#allocation6], 4294954752  ;;  %v1396_v0 = vmov 0.0|0.0   ;;  %vm1397_vm0 = vmmov 0   ;;  %v1398_v1 = vmov 0.0   ;;  %v61_v2 = vld [vmem:[#allocation5] sm:$0xff] }
  0x37   :  { %1117 = vmatprep.subr.bf16.mxu0 %v1396_v0  ;;  %904 = vmatprep.mubr.msk.f32.mxu0 %vm1397_vm0, %v1398_v1  ;;  %v62_v3 = vld [vmem:[#allocation5 + $0x8] sm:$0xff]  ;;  %v144_v5 = vld [vmem:[#allocation7] sm:$0xff]  ;;  %v145_v6 = vld [vmem:[#allocation7 + $0x8] sm:$0xff]  ;;  %vm70_vm1 = vcmask 130048   ;;  %s1399_s16 = smov [#allocation8]   ;;  %vm758_vm2 = vcmask 261120  }
  0x38   :  { %1120 = vmatprep.subr.bf16.mxu1 %v1396_v0  ;;  %939 = vmatprep.mubr.msk.f32.mxu1 %vm1397_vm0, %v1398_v1  ;;  %v1118_v4 = vpack.c.bf16 %v62_v3, %v61_v2  ;;  %v146_v7 = vld [vmem:[#allocation7 + $0x10] sm:$0xff]  ;;  %v1121_v8 = vpack.c.bf16 %v145_v6, %v144_v5  ;;  %v147_v9 = vld [vmem:[#allocation7 + $0x18] sm:$0xff]  ;;  %v60_v10 = vld [vmem:[#allocation2] sm:$0xff]  ;;  %s766_s17 = sshll.u32 %s1399_s16, 4  ;;  %s767_s17 = int_to_ptr.vmem [resolvable:$true] %s766_s17 }
  0x39   :  { %v1124_v11 = vpack.c.bf16 %v147_v9, %v146_v7  ;;  %v148_v12 = vld [vmem:[#allocation7 + $0x20] sm:$0xff]  ;;  %v149_v13 = vld [vmem:[#allocation7 + $0x28] sm:$0xff]  ;;  %v150_v15 = vld [vmem:[#allocation7 + $0x30] sm:$0xff]  ;;  %s1363_s1 = scalar_lea.vmem %s767_s17, 128  ;;  %p1368_p11 = scmp.lt.s32.totalorder %s767_s17, %s767_s17 }
  0x3a   :  { %1119 = vmatpush3.bf16.msra.mxu0 %v1118_v4  ;;  %1122 = vmatpush3.bf16.msra.mxu1 %v1121_v8  ;;  %v1127_v14 = vpack.c.bf16 %v149_v13, %v148_v12  ;;  %v151_v16 = vld [vmem:[#allocation7 + $0x38] sm:$0xff]  ;;  %v152_v18 = vld [vmem:[#allocation7 + $0x40] sm:$0xff]  ;;  %v153_v19 = vld [vmem:[#allocation7 + $0x48] sm:$0xff]  ;;  %p1364_p10 = scmp.ne.s32.totalorder %s767_s17, %s1363_s1  ;;  %p1369_p12 = scmp.lt.s32.totalorder %s1363_s1, %s1363_s1 }
  0x3b   :  { %1144 = vmatprep.subr.bf16.mxu0 %v1396_v0  ;;  %1123 = vmatprep.subr.bf16.mxu1 %v1396_v0  ;;  %v1130_v17 = vpack.c.bf16 %v151_v16, %v150_v15  ;;  %v1133_v20 = vpack.c.bf16 %v153_v19, %v152_v18  ;;  %v154_v21 = vld [vmem:[#allocation7 + $0x50] sm:$0xff]  ;;  %v155_v22 = vld [vmem:[#allocation7 + $0x58] sm:$0xff]  ;;  %v156_v24 = vld [vmem:[#allocation7 + $0x60] sm:$0xff] }
  0x3c   :  { %v1136_v23 = vpack.c.bf16 %v155_v22, %v154_v21  ;;  %v157_v25 = vld [vmem:[#allocation7 + $0x68] sm:$0xff]  ;;  %v158_v27 = vld [vmem:[#allocation7 + $0x70] sm:$0xff]  ;;  %v159_v28 = vld [vmem:[#allocation7 + $0x78] sm:$0xff]  ;;  %p1370_p13 = por %p1369_p12, %p1368_p11 }
  0x3d   :  { %905 = vmatmul.mubr.msk.f32.vlgmr.msra.gmra.mrb[0].mxu0 %vm70_vm1, %v60_v10  ;;  %v1139_v26 = vpack.c.bf16 %v157_v25, %v156_v24  ;;  %v1142_v29 = vpack.c.bf16 %v159_v28, %v158_v27  ;;  %v776_v30 = vld [vmem:[%s1578_s2] ss:$0 sm:$0xff]  ;;  %v245_v34 = vld [vmem:[#allocation7 + $0x80] sm:$0xff]  ;;  %v247_v37 = vld [vmem:[#allocation7 + $0x90] sm:$0xff] }
  0x3e   :  { %974 = vmatprep.mubr.msk.f32.mxu0 %vm1397_vm0, %v1398_v1  ;;  %1125 = vmatpush3.bf16.msra.mxu1 %v1124_v11  ;;  %v246_v35 = vld [vmem:[#allocation7 + $0x88] sm:$0xff]  ;;  %v248_v38 = vld [vmem:[#allocation7 + $0x98] sm:$0xff]  ;;  %v249_v40 = vld [vmem:[#allocation7 + $0xa0] sm:$0xff]  ;;  %p1371_p0 = pnand %p1370_p13, %p1364_p10 }
  0x3f   :  { %1126 = vmatprep.subr.bf16.mxu1 %v1396_v0  ;;  %v1145_v36 = vpack.c.bf16 %v246_v35, %v245_v34  ;;  %v1148_v39 = vpack.c.bf16 %v248_v38, %v247_v37  ;;  %v250_v41 = vld [vmem:[#allocation7 + $0xa8] sm:$0xff]  ;;  %v251_v43 = vld [vmem:[#allocation7 + $0xb0] sm:$0xff]  ;;  %v252_v44 = vld [vmem:[#allocation7 + $0xb8] sm:$0xff] }
  0x40   :  { %v1151_v42 = vpack.c.bf16 %v250_v41, %v249_v40  ;;  %v1154_v45 = vpack.c.bf16 %v252_v44, %v251_v43  ;;  %v253_v46 = vld [vmem:[#allocation7 + $0xc0] sm:$0xff]  ;;  %v254_v47 = vld [vmem:[#allocation7 + $0xc8] sm:$0xff]  ;;  %v255_v49 = vld [vmem:[#allocation7 + $0xd0] sm:$0xff] }
  0x41   :  { %1146 = vmatpush3.bf16.msra.mxu0 %v1145_v36  ;;  %v1157_v48 = vpack.c.bf16 %v254_v47, %v253_v46  ;;  %v256_v50 = vld [vmem:[#allocation7 + $0xd8] sm:$0xff]  ;;  %v257_v52 = vld [vmem:[#allocation7 + $0xe0] sm:$0xff]  ;;  %v258_v53 = vld [vmem:[#allocation7 + $0xe8] sm:$0xff] }
  0x42   :  { %1128 = vmatpush3.bf16.msra.mxu1 %v1127_v14  ;;  %1147 = vmatprep.subr.bf16.mxu0 %v1396_v0  ;;  %v1160_v51 = vpack.c.bf16 %v256_v50, %v255_v49  ;;  %v1163_v54 = vpack.c.bf16 %v258_v53, %v257_v52  ;;  %v259_v55 = vld [vmem:[#allocation7 + $0xf0] sm:$0xff]  ;;  %v260_v56 = vld [vmem:[#allocation7 + $0xf8] sm:$0xff]  ;;  %v778_v58 = vld [vmem:[%s1580_s4] ss:$0 sm:$0xff] }
  0x43   :  { %1129 = vmatprep.subr.bf16.mxu1 %v1396_v0  ;;  %v1166_v57 = vpack.c.bf16 %v260_v56, %v259_v55  ;;  %v347_v5 = vld [vmem:[#allocation7 + $0x100] sm:$0xff]  ;;  %v348_v6 = vld [vmem:[#allocation7 + $0x108] sm:$0xff]  ;;  %v349_v8 = vld [vmem:[#allocation7 + $0x110] sm:$0xff] }
  0x44   :  { %v1169_v7 = vpack.c.bf16 %v348_v6, %v347_v5  ;;  %v350_v9 = vld [vmem:[#allocation7 + $0x118] sm:$0xff]  ;;  %v351_v11 = vld [vmem:[#allocation7 + $0x120] sm:$0xff]  ;;  %v352_v12 = vld [vmem:[#allocation7 + $0x128] sm:$0xff] }
  0x45   :  { %1149 = vmatpush3.bf16.msra.mxu0 %v1148_v39  ;;  %v1172_v10 = vpack.c.bf16 %v350_v9, %v349_v8  ;;  %v1175_v13 = vpack.c.bf16 %v352_v12, %v351_v11  ;;  %v353_v14 = vld [vmem:[#allocation7 + $0x130] sm:$0xff]  ;;  %v354_v15 = vld [vmem:[#allocation7 + $0x138] sm:$0xff]  ;;  %v356_v18 = vld [vmem:[#allocation7 + $0x148] sm:$0xff] }
  0x46   :  { %1131 = vmatpush3.bf16.msra.mxu1 %v1130_v17  ;;  %1150 = vmatprep.subr.bf16.mxu0 %v1396_v0  ;;  %v1178_v16 = vpack.c.bf16 %v354_v15, %v353_v14  ;;  %v355_v17 = vld [vmem:[#allocation7 + $0x140] sm:$0xff]  ;;  %v358_v21 = vld [vmem:[#allocation7 + $0x158] sm:$0xff]  ;;  %v360_v24 = vld [vmem:[#allocation7 + $0x168] sm:$0xff] }
  0x47   :  { %1132 = vmatprep.subr.bf16.mxu1 %v1396_v0  ;;  %v1181_v19 = vpack.c.bf16 %v356_v18, %v355_v17  ;;  %v362_v27 = vld [vmem:[#allocation7 + $0x178] sm:$0xff]  ;;  %v451_v39 = vld [vmem:[#allocation7 + $0x180] sm:$0xff]  ;;  %v452_v40 = vld [vmem:[#allocation7 + $0x188] sm:$0xff] }
  0x48   :  { %v1193_v41 = vpack.c.bf16 %v452_v40, %v451_v39  ;;  %v454_v43 = vld [vmem:[#allocation7 + $0x198] sm:$0xff]  ;;  %v456_v46 = vld [vmem:[#allocation7 + $0x1a8] sm:$0xff]  ;;  %v553_v12 = vld [vmem:[#allocation7 + $0x200] sm:$0xff] }
  0x49   :  { %1152 = vmatpush3.bf16.msra.mxu0 %v1151_v42  ;;  %v453_v42 = vld [vmem:[#allocation7 + $0x190] sm:$0xff]  ;;  %v458_v49 = vld [vmem:[#allocation7 + $0x1b8] sm:$0xff]  ;;  %v460_v52 = vld [vmem:[#allocation7 + $0x1c8] sm:$0xff] }
  0x4a   :  { %1134 = vmatpush3.bf16.msra.mxu1 %v1133_v20  ;;  %1153 = vmatprep.subr.bf16.mxu0 %v1396_v0  ;;  %v357_v20 = vld [vmem:[#allocation7 + $0x150] sm:$0xff]  ;;  %v1196_v44 = vpack.c.bf16 %v454_v43, %v453_v42  ;;  %v462_v55 = vld [vmem:[#allocation7 + $0x1d8] sm:$0xff]  ;;  %v558_v18 = vld [vmem:[#allocation7 + $0x228] sm:$0xff] }
  0x4b   :  { %1135 = vmatprep.subr.bf16.mxu1 %v1396_v0  ;;  %v1184_v22 = vpack.c.bf16 %v358_v21, %v357_v20  ;;  %v555_v15 = vld [vmem:[#allocation7 + $0x210] sm:$0xff] }
  0x4c   :  { %v559_v20 = vld [vmem:[#allocation7 + $0x230] sm:$0xff] }
  0x4d   :  { %1155 = vmatpush3.bf16.msra.mxu0 %v1154_v45  ;;  %v455_v45 = vld [vmem:[#allocation7 + $0x1a0] sm:$0xff] }
  0x4e   :  { %1137 = vmatpush3.bf16.msra.mxu1 %v1136_v23  ;;  %1156 = vmatprep.subr.bf16.mxu0 %v1396_v0  ;;  %v359_v23 = vld [vmem:[#allocation7 + $0x160] sm:$0xff]  ;;  %v1199_v47 = vpack.c.bf16 %v456_v46, %v455_v45  ;;  %v656_v45 = vld [vmem:[#allocation7 + $0x288] sm:$0xff] }
  0x4f   :  { %1138 = vmatprep.subr.bf16.mxu1 %v1396_v0  ;;  %v1187_v25 = vpack.c.bf16 %v360_v24, %v359_v23  ;;  %v562_v23 = vld [vmem:[#allocation7 + $0x248] sm:$0xff] }
  0x51   :  { %1158 = vmatpush3.bf16.msra.mxu0 %v1157_v48  ;;  %v457_v48 = vld [vmem:[#allocation7 + $0x1b0] sm:$0xff] }
  0x52   :  { %1140 = vmatpush3.bf16.msra.mxu1 %v1139_v26  ;;  %1159 = vmatprep.subr.bf16.mxu0 %v1396_v0  ;;  %v361_v26 = vld [vmem:[#allocation7 + $0x170] sm:$0xff]  ;;  %v1202_v50 = vpack.c.bf16 %v458_v49, %v457_v48  ;;  %v658_v48 = vld [vmem:[#allocation7 + $0x298] sm:$0xff] }
  0x53   :  { %1141 = vmatprep.subr.bf16.mxu1 %v1396_v0  ;;  %v1190_v28 = vpack.c.bf16 %v362_v27, %v361_v26  ;;  %v564_v26 = vld [vmem:[#allocation7 + $0x258] sm:$0xff] }
  0x55   :  { %1161 = vmatpush3.bf16.msra.mxu0 %v1160_v51  ;;  %v459_v51 = vld [vmem:[#allocation7 + $0x1c0] sm:$0xff] }
  0x56   :  { %1143 = vmatpush3.bf16.msra.mxu1 %v1142_v29  ;;  %1162 = vmatprep.subr.bf16.mxu0 %v1396_v0  ;;  %v781_v29 = vld [vmem:[%s1580_s4 + $0x1] ss:$0 sm:$0xff]  ;;  %v1205_v53 = vpack.c.bf16 %v460_v52, %v459_v51 }
  0x57   :  { %1168 = vmatprep.subr.bf16.mxu1 %v1396_v0  ;;  %v660_v51 = vld [vmem:[#allocation7 + $0x2a8] sm:$0xff] }
  0x59   :  { %1164 = vmatpush3.bf16.msra.mxu0 %v1163_v54  ;;  %v461_v54 = vld [vmem:[#allocation7 + $0x1d0] sm:$0xff] }
  0x5a   :  { %1165 = vmatprep.subr.bf16.mxu0 %v1396_v0  ;;  %v1208_v56 = vpack.c.bf16 %v462_v55, %v461_v54  ;;  %v662_v54 = vld [vmem:[#allocation7 + $0x2b8] sm:$0xff] }
  0x5d   :  { %1167 = vmatpush3.bf16.msra.mxu0 %v1166_v57  ;;  %v463_v57 = vld [vmem:[#allocation7 + $0x1e0] sm:$0xff] }
  0x5e   :  { %1192 = vmatprep.subr.bf16.mxu0 %v1396_v0 }
 0x110   :  { %v140_v31 = vpop.f32.mrb[0].mxu0 }
 0x111   :  { %v1492_v32 = vadd.f32 %v776_v30, %v140_v31  ;;  %v906_v33 = vpop.f32.mrb[1].mxu0 }
 0x113   :  { %940 = vmatmul.mubr.f32.vlgmr.msra.gmra.mrb[0].mxu1 %v1492_v32 }
 0x114   :  { %1009 = vmatprep.mubr.msk.f32.mxu1 %vm1397_vm0, %v1398_v1  ;;  %1170 = vmatpush3.bf16.msra.mxu1 %v1169_v7 }
 0x115   :  { %1171 = vmatprep.subr.bf16.mxu1 %v1396_v0 }
 0x118   :  { %1173 = vmatpush3.bf16.msra.mxu1 %v1172_v10 }
 0x119   :  { %1174 = vmatprep.subr.bf16.mxu1 %v1396_v0 }
 0x11c   :  { %1176 = vmatpush3.bf16.msra.mxu1 %v1175_v13  ;;  %v554_v13 = vld [vmem:[#allocation7 + $0x208] sm:$0xff] }
 0x11d   :  { %1177 = vmatprep.subr.bf16.mxu1 %v1396_v0  ;;  %v1217_v14 = vpack.c.bf16 %v554_v13, %v553_v12 }
 0x120   :  { %1179 = vmatpush3.bf16.msra.mxu1 %v1178_v16  ;;  %v556_v16 = vld [vmem:[#allocation7 + $0x218] sm:$0xff] }
 0x121   :  { %1180 = vmatprep.subr.bf16.mxu1 %v1396_v0  ;;  %v1220_v17 = vpack.c.bf16 %v556_v16, %v555_v15 }
 0x124   :  { %1182 = vmatpush3.bf16.msra.mxu1 %v1181_v19 }
 0x125   :  { %1183 = vmatprep.subr.bf16.mxu1 %v1396_v0 }
 0x128   :  { %1185 = vmatpush3.bf16.msra.mxu1 %v1184_v22  ;;  %v561_v22 = vld [vmem:[#allocation7 + $0x240] sm:$0xff] }
 0x129   :  { %1186 = vmatprep.subr.bf16.mxu1 %v1396_v0  ;;  %v1229_v24 = vpack.c.bf16 %v562_v23, %v561_v22 }
 0x12c   :  { %1188 = vmatpush3.bf16.msra.mxu1 %v1187_v25  ;;  %v563_v25 = vld [vmem:[#allocation7 + $0x250] sm:$0xff] }
 0x12d   :  { %1189 = vmatprep.subr.bf16.mxu1 %v1396_v0  ;;  %v1232_v27 = vpack.c.bf16 %v564_v26, %v563_v25 }
 0x130   :  { %1191 = vmatpush3.bf16.msra.mxu1 %v1190_v28  ;;  %v565_v28 = vld [vmem:[#allocation7 + $0x260] sm:$0xff] }
 0x131   :  { %1216 = vmatprep.subr.bf16.mxu1 %v1396_v0 }
 0x1e6   :  { %v233_v59 = vpop.f32.mrb[0].mxu1 }
 0x1e7   :  { %v234_v60 = vadd.f32 %v778_v58, %v233_v59  ;;  %v941_v61 = vpop.f32.mrb[1].mxu1  ;;  %v464_v58 = vld [vmem:[#allocation7 + $0x1e8] sm:$0xff] }
 0x1e8   :  { %v1211_v59 = vpack.c.bf16 %v464_v58, %v463_v57  ;;  %v466_v61 = vld [vmem:[#allocation7 + $0x1f8] sm:$0xff]  ;;  %v664_v57 = vld [vmem:[#allocation7 + $0x2c8] sm:$0xff] }
 0x1e9   :  { %v779_v62 = vmul.f32 -1.442695, %v234_v60 }
 0x1eb   :  { %1273 = vpow2.f32 %v779_v62 }
 0x1f5   :  { %v1274_v63 = vpop.eup %1273 }
 0x1f6   :  { %v240_v2 = vadd.f32 1.0, %v1274_v63  ;;  %v784_v63 = vld [vmem:[%s1580_s4 + $0x2] ss:$0 sm:$0xff] }
 0x1f8   :  { %1275 = vrcp.f32 %v240_v2 }
 0x202   :  { %v1276_v3 = vpop.eup %1275 }
 0x203   :  { %v243_v4 = vmul.f32 %v1276_v3, %v234_v60  ;;  %v465_v60 = vld [vmem:[#allocation7 + $0x1f0] sm:$0xff] }
 0x204   :  { %v1214_v62 = vpack.c.bf16 %v466_v61, %v465_v60  ;;  %v666_v60 = vld [vmem:[#allocation7 + $0x2d8] sm:$0xff] }
 0x205   :  { %975 = vmatmul.mubr.f32.vlgmr.msra.gmra.mrb[2].mxu0 %v243_v4 }
 0x206   :  { %1044 = vmatprep.mubr.msk.f32.mxu0 %vm1397_vm0, %v1398_v1  ;;  %1194 = vmatpush3.bf16.msra.mxu0 %v1193_v41 }
 0x207   :  { %1195 = vmatprep.subr.bf16.mxu0 %v1396_v0 }
 0x20a   :  { %1197 = vmatpush3.bf16.msra.mxu0 %v1196_v44  ;;  %v655_v44 = vld [vmem:[#allocation7 + $0x280] sm:$0xff] }
 0x20b   :  { %1198 = vmatprep.subr.bf16.mxu0 %v1396_v0  ;;  %v1241_v46 = vpack.c.bf16 %v656_v45, %v655_v44 }
 0x20e   :  { %1200 = vmatpush3.bf16.msra.mxu0 %v1199_v47  ;;  %v657_v47 = vld [vmem:[#allocation7 + $0x290] sm:$0xff] }
 0x20f   :  { %1201 = vmatprep.subr.bf16.mxu0 %v1396_v0  ;;  %v1244_v49 = vpack.c.bf16 %v658_v48, %v657_v47 }
 0x212   :  { %1203 = vmatpush3.bf16.msra.mxu0 %v1202_v50  ;;  %v659_v50 = vld [vmem:[#allocation7 + $0x2a0] sm:$0xff] }
 0x213   :  { %1204 = vmatprep.subr.bf16.mxu0 %v1396_v0  ;;  %v1247_v52 = vpack.c.bf16 %v660_v51, %v659_v50 }
 0x216   :  { %1206 = vmatpush3.bf16.msra.mxu0 %v1205_v53  ;;  %v661_v53 = vld [vmem:[#allocation7 + $0x2b0] sm:$0xff] }
 0x217   :  { %1207 = vmatprep.subr.bf16.mxu0 %v1396_v0  ;;  %v1250_v55 = vpack.c.bf16 %v662_v54, %v661_v53 }
 0x21a   :  { %1209 = vmatpush3.bf16.msra.mxu0 %v1208_v56  ;;  %v663_v56 = vld [vmem:[#allocation7 + $0x2c0] sm:$0xff] }
 0x21b   :  { %1210 = vmatprep.subr.bf16.mxu0 %v1396_v0  ;;  %v1253_v58 = vpack.c.bf16 %v664_v57, %v663_v56 }
 0x21e   :  { %1212 = vmatpush3.bf16.msra.mxu0 %v1211_v59  ;;  %v665_v59 = vld [vmem:[#allocation7 + $0x2d0] sm:$0xff] }
 0x21f   :  { %1213 = vmatprep.subr.bf16.mxu0 %v1396_v0  ;;  %v1256_v61 = vpack.c.bf16 %v666_v60, %v665_v59 }
 0x222   :  { %1215 = vmatpush3.bf16.msra.mxu0 %v1214_v62  ;;  %v667_v62 = vld [vmem:[#allocation7 + $0x2e0] sm:$0xff] }
 0x223   :  { %1240 = vmatprep.subr.bf16.mxu0 %v1396_v0 }
 0x2d8   :  { %v335_v30 = vpop.f32.mrb[2].mxu0 }
 0x2d9   :  { %v336_v31 = vadd.f32 %v781_v29, %v335_v30  ;;  %v976_v33 = vpop.f32.mrb[3].mxu0  ;;  %v566_v29 = vld [vmem:[#allocation7 + $0x268] sm:$0xff] }
 0x2da   :  { %v1235_v30 = vpack.c.bf16 %v566_v29, %v565_v28  ;;  %v568_v33 = vld [vmem:[#allocation7 + $0x278] sm:$0xff] }
 0x2db   :  { %v782_v34 = vmul.f32 -1.442695, %v336_v31 }
 0x2dd   :  { %1277 = vpow2.f32 %v782_v34 }
 0x2e7   :  { %v1278_v35 = vpop.eup %1277 }
 0x2e8   :  { %v342_v36 = vadd.f32 1.0, %v1278_v35  ;;  %v787_v35 = vld [vmem:[%s1580_s4 + $0x3] ss:$0 sm:$0xff] }
 0x2ea   :  { %1279 = vrcp.f32 %v342_v36 }
 0x2f4   :  { %v1280_v37 = vpop.eup %1279 }
 0x2f5   :  { %v345_v38 = vmul.f32 %v1280_v37, %v336_v31  ;;  %v567_v31 = vld [vmem:[#allocation7 + $0x270] sm:$0xff] }
 0x2f6   :  { %v1238_v34 = vpack.c.bf16 %v568_v33, %v567_v31 }
 0x2f7   :  { %1010 = vmatmul.mubr.f32.vlgmr.msra.gmra.mrb[2].mxu1 %v345_v38 }
 0x2f8   :  { %1079 = vmatprep.mubr.msk.f32.mxu1 %vm1397_vm0, %v1398_v1  ;;  %1218 = vmatpush3.bf16.msra.mxu1 %v1217_v14 }
 0x2f9   :  { %1219 = vmatprep.subr.bf16.mxu1 %v1396_v0 }
 0x2fc   :  { %1221 = vmatpush3.bf16.msra.mxu1 %v1220_v17 }
 0x2fd   :  { %1222 = vmatprep.subr.bf16.mxu1 %v1396_v0 }
 0x3ca   :  { %v437_v2 = vpop.f32.mrb[2].mxu1 }
 0x3cb   :  { %v438_v3 = vadd.f32 %v784_v63, %v437_v2  ;;  %v1011_v4 = vpop.f32.mrb[3].mxu1  ;;  %v668_v63 = vld [vmem:[#allocation7 + $0x2e8] sm:$0xff] }
 0x3cc   :  { %v1259_v2 = vpack.c.bf16 %v668_v63, %v667_v62  ;;  %v670_v4 = vld [vmem:[#allocation7 + $0x2f8] sm:$0xff] }
 0x3cd   :  { %v785_v5 = vmul.f32 -1.442695, %v438_v3 }
 0x3cf   :  { %1281 = vpow2.f32 %v785_v5 }
 0x3d9   :  { %v1282_v6 = vpop.eup %1281 }
 0x3da   :  { %v444_v7 = vadd.f32 1.0, %v1282_v6  ;;  %v790_v6 = vld [vmem:[%s1580_s4 + $0x4] ss:$0 sm:$0xff] }
 0x3dc   :  { %1283 = vrcp.f32 %v444_v7 }
 0x3e6   :  { %v1284_v8 = vpop.eup %1283 }
 0x3e7   :  { %v447_v9 = vmul.f32 %v1284_v8, %v438_v3  ;;  %v669_v3 = vld [vmem:[#allocation7 + $0x2f0] sm:$0xff] }
 0x3e8   :  { %v1262_v5 = vpack.c.bf16 %v670_v4, %v669_v3 }
 0x3e9   :  { %v448_v10 = vadd.f32 %v447_v9, %v1492_v32  ;;  %v557_v32 = vld [vmem:[#allocation7 + $0x220] sm:$0xff] }
 0x3ea   :  { %v1223_v19 = vpack.c.bf16 %v558_v18, %v557_v32 }
 0x3eb   :  { %v1535_v11 = vmul.f32 0.70710677, %v448_v10 }
 0x3ec   :  { %1224 = vmatpush3.bf16.msra.mxu1 %v1223_v19 }
 0x3ed   :  { %1045 = vmatmul.mubr.f32.vlgmr.msra.gmra.mrb[4].mxu0 %v1535_v11  ;;  %1225 = vmatprep.subr.bf16.mxu1 %v1396_v0 }
 0x3ee   :  { %1114 = vmatprep.mubr.msk.f32.mxu0 %vm1397_vm0, %v1398_v1  ;;  %v560_v1 = vld [vmem:[#allocation7 + $0x238] sm:$0xff]  ;;  %1242 = vmatpush3.bf16.msra.mxu0 %v1241_v46 }
 0x3ef   :  { %v1226_v21 = vpack.c.bf16 %v560_v1, %v559_v20  ;;  %1243 = vmatprep.subr.bf16.mxu0 %v1396_v0 }
 0x3f1   :  { %1227 = vmatpush3.bf16.msra.mxu1 %v1226_v21 }
 0x3f2   :  { %1228 = vmatprep.subr.bf16.mxu1 %v1396_v0  ;;  %1245 = vmatpush3.bf16.msra.mxu0 %v1244_v49 }
 0x3f3   :  { %1246 = vmatprep.subr.bf16.mxu0 %v1396_v0 }
 0x3f5   :  { %1230 = vmatpush3.bf16.msra.mxu1 %v1229_v24 }
 0x3f6   :  { %1231 = vmatprep.subr.bf16.mxu1 %v1396_v0  ;;  %1248 = vmatpush3.bf16.msra.mxu0 %v1247_v52 }
 0x3f7   :  { %1249 = vmatprep.subr.bf16.mxu0 %v1396_v0 }
 0x3f9   :  { %1233 = vmatpush3.bf16.msra.mxu1 %v1232_v27 }
 0x3fa   :  { %1234 = vmatprep.subr.bf16.mxu1 %v1396_v0  ;;  %1251 = vmatpush3.bf16.msra.mxu0 %v1250_v55 }
 0x3fb   :  { %1252 = vmatprep.subr.bf16.mxu0 %v1396_v0 }
 0x3fd   :  { %1236 = vmatpush3.bf16.msra.mxu1 %v1235_v30 }
 0x3fe   :  { %1237 = vmatprep.subr.bf16.mxu1 %v1396_v0  ;;  %1254 = vmatpush3.bf16.msra.mxu0 %v1253_v58 }
 0x3ff   :  { %1255 = vmatprep.subr.bf16.mxu0 %v1396_v0 }
 0x401   :  { %1239 = vmatpush3.bf16.msra.mxu1 %v1238_v34 }
 0x402   :  { %1257 = vmatpush3.bf16.msra.mxu0 %v1256_v61 }
 0x403   :  { %1258 = vmatprep.subr.bf16.mxu0 %v1396_v0 }
 0x406   :  { %1260 = vmatpush3.bf16.msra.mxu0 %v1259_v2 }
 0x407   :  { %1261 = vmatprep.subr.bf16.mxu0 %v1396_v0  ;;  %v793_v0 = vld [vmem:[%s1580_s4 + $0x5] ss:$0 sm:$0xff] }
 0x40a   :  { %1263 = vmatpush3.bf16.msra.mxu0 %v1262_v5 }
 0x4c0   :  { %v541_v36 = vpop.f32.mrb[4].mxu0 }
 0x4c1   :  { %v542_v37 = vadd.f32 %v787_v35, %v541_v36  ;;  %v1046_v38 = vpop.f32.mrb[5].mxu0 }
 0x4c3   :  { %v788_v39 = vmul.f32 -1.442695, %v542_v37 }
 0x4c5   :  { %1285 = vpow2.f32 %v788_v39 }
 0x4cf   :  { %v1286_v40 = vpop.eup %1285 }
 0x4d0   :  { %v548_v41 = vadd.f32 1.0, %v1286_v40 }
 0x4d2   :  { %1287 = vrcp.f32 %v548_v41 }
 0x4dc   :  { %v1288_v42 = vpop.eup %1287 }
 0x4dd   :  { %v551_v43 = vmul.f32 %v1288_v42, %v542_v37 }
 0x4df   :  { %1080 = vmatmul.mubr.f32.vlgmr.msra.gmra.mrb[4].mxu1 %v551_v43 }
 0x5b2   :  { %v643_v7 = vpop.f32.mrb[4].mxu1 }
 0x5b3   :  { %v644_v8 = vadd.f32 %v790_v6, %v643_v7  ;;  %v1081_v9 = vpop.f32.mrb[5].mxu1 }
 0x5b5   :  { %v791_v10 = vmul.f32 -1.442695, %v644_v8 }
 0x5b7   :  { %1289 = vpow2.f32 %v791_v10 }
 0x5c1   :  { %v1290_v12 = vpop.eup %1289 }
 0x5c2   :  { %v650_v13 = vadd.f32 1.0, %v1290_v12 }
 0x5c4   :  { %1291 = vrcp.f32 %v650_v13 }
 0x5ce   :  { %v1292_v14 = vpop.eup %1291 }
 0x5cf   :  { %v653_v15 = vmul.f32 %v1292_v14, %v644_v8 }
 0x5d1   :  { %1115 = vmatmul.mubr.f32.vlgmr.msra.gmra.mrb[6].mxu0 %v653_v15 }
 0x6a4   :  { %v745_v16 = vpop.f32.mrb[6].mxu0 }
 0x6a5   :  { %v746_v17 = vadd.f32 %v793_v0, %v745_v16  ;;  %v1116_v32 = vpop.f32.mrb[7].mxu0 }
 0x6a7   :  { %v794_v18 = vmul.f32 -1.442695, %v746_v17 }
 0x6a9   :  { %1293 = vpow2.f32 %v794_v18 }
 0x6b3   :  { %v1294_v19 = vpop.eup %1293 }
 0x6b4   :  { %v752_v20 = vadd.f32 1.0, %v1294_v19 }
 0x6b6   :  { %1295 = vrcp.f32 %v752_v20 }
 0x6c0   :  { %v1296_v1 = vpop.eup %1295 }
 0x6c1   :  { %v755_v21 = vmul.f32 %v1296_v1, %v746_v17 }
 0x6c3   :  { %v756_v22 = vadd.f32 %v755_v21, %v1535_v11 }
 0x6c5   :  { %v757_v23 = vmul.f32 0.70710677, %v756_v22 }
 0x6c7   :  { %759 = vst.msk [vmem:[#allocation8] sm:$0xff] %vm758_vm2, %v757_v23 }
 0x6c8   :  { %1374 = shalt.err (!%p1371_p0)
}
 0x6c9   :  { %s1375_s19 = scalar_lea.hbm %s1581_s5, 128 }
 0x6ca   :  { %p1376_p1 = scmp.ne.s32.totalorder %s1581_s5, %s1375_s19  ;;  %p1379_p2 = scmp.lt.u32.totalorder %s1375_s19, %s1581_s5 }
 0x6cc   :  { %p1381_p3 = pnand %p1379_p2, %p1376_p1 }
 0x6ce   :  { %1384 = shalt.err (!%p1381_p3)
}
 0x6cf   :  { %769 = dma.vmem_to_hbm [thread:$0]  %s767_s17, 128, %s1581_s5, [#allocation4]  }
 0x6d0   :  { %1389 = dma.done.wait [#allocation4], 128  }
 0x6d1   :  { %1390 = vsyncadd [#allocation4], 4294967168 }
 0x6d2   :  { %773 = vsyncpa [#allocation3], 1 }
 0x6d3   :  { %774 = vsyncpa [#allocation6], 1 }
 0x6d4   :  { %775 = vsyncpa [#allocation4], 1 }

</bundles_post_ra>
